<compile_context>
chip_gen: v7x
topology: tpu7x:2x2x1
jax: 0.10.0
libtpu: 0.0.40
codegen_flags: <defaults>
</compile_context>

<pallas_src>
import jax
import jax.numpy as jnp
from jax.experimental import pallas as pl
from jax.experimental.pallas import tpu as pltpu

LATENT = 256
HIDDEN = LATENT // 2  # 128


def _round_up(n, m):
    return ((n + m - 1) // m) * m


def _discriminator_kernel(x_ref, w1_ref, b1_ref, w2_ref, b2_ref, w3_ref,
                          scal_ref, o_ref):
    # x tile: (TB, 256) f32 streamed from HBM; weights are VMEM-resident.
    x = x_ref[...]

    # ---- Linear 1: (TB,256) @ (256,128) on the MXU, bf16 in / f32 acc ----
    h = jnp.dot(x.astype(jnp.bfloat16), w1_ref[...],
                preferred_element_type=jnp.float32) + b1_ref[...]
    a1 = scal_ref[0]                              # PReLU slope (scalar, SMEM)
    h = jnp.where(h >= 0.0, h, a1 * h)            # f32 on the VPU

    # ---- Linear 2: (TB,128) @ (128,128) ----
    h = jnp.dot(h.astype(jnp.bfloat16), w2_ref[...],
                preferred_element_type=jnp.float32) + b2_ref[...]
    a2 = scal_ref[1]
    h = jnp.where(h >= 0.0, h, a2 * h)

    # ---- Linear 3 (out_features = 1): VPU multiply + XLU lane reduction,
    # avoiding an N=1 MXU matmul and a (128,1) weight tile.
    out = jnp.sum(h * w3_ref[...], axis=-1, keepdims=True) + scal_ref[2]
    o_ref[...] = out


def prepare_params(params):
    """One-time layout prep: transpose weights to (in,out), cast MXU weights
    to bf16, flatten biases, pack the three scalars (a1, a2, b3) for SMEM."""
    return {
        "w1t": params["w1"].T.astype(jnp.bfloat16),          # (256, 128)
        "w2t": params["w2"].T.astype(jnp.bfloat16),          # (128, 128)
        "w3r": params["w3"].reshape(1, HIDDEN).astype(jnp.float32),  # (1, 128)
        "b1": params["b1"].reshape(1, HIDDEN).astype(jnp.float32),
        "b2": params["b2"].reshape(1, HIDDEN).astype(jnp.float32),
        "scal": jnp.stack([params["a1"].reshape(()),
                           params["a2"].reshape(()),
                           params["b3"].reshape(())]).astype(jnp.float32),
    }


def discriminator_forward(x, prep, *, block_rows=1024):
    """x: (B, LATENT) float32.  prep: output of prepare_params()."""
    B = x.shape[0]
    # Batch tile: multiple of 8 (f32 sublanes), capped at block_rows.
    TB = min(block_rows, _round_up(max(B, 8), 8))
    Bp = _round_up(B, TB)
    if Bp != B:
        x = jnp.pad(x, ((0, Bp - B), (0, 0)))
    grid = (Bp // TB,)

    const2 = lambda i: (0, 0)   # weights/biases: same block every iteration

    out = pl.pallas_call(
        _discriminator_kernel,
        out_shape=jax.ShapeDtypeStruct((Bp, 1), jnp.float32),
        grid=grid,
        in_specs=[
            pl.BlockSpec((TB, LATENT), lambda i: (i, 0)),       # x (streamed)
            pl.BlockSpec((LATENT, HIDDEN), const2),             # w1t (bf16)
            pl.BlockSpec((1, HIDDEN), const2),                  # b1
            pl.BlockSpec((HIDDEN, HIDDEN), const2),             # w2t (bf16)
            pl.BlockSpec((1, HIDDEN), const2),                  # b2
            pl.BlockSpec((1, HIDDEN), const2),                  # w3 row
            pl.BlockSpec(memory_space=pltpu.MemorySpace.SMEM),  # [a1, a2, b3]
        ],
        out_specs=pl.BlockSpec((TB, 1), lambda i: (i, 0)),
        compiler_params=pltpu.CompilerParams(
            dimension_semantics=("parallel",),       # v7x: shard over 2 TCs
            vmem_limit_bytes=32 * 1024 * 1024,       # headroom even on v7x
        ),
    )(x, prep["w1t"], prep["b1"], prep["w2t"], prep["b2"], prep["w3r"],
      prep["scal"])
    return out[:B]


def init_params(key):
    """Deterministic init mirroring PyTorch defaults (uniform +/- 1/sqrt(fan_in),
    PReLU slope = 0.25)."""
    ks = jax.random.split(key, 6)

    def lin(kw, kb, fan_in, fan_out):
        bound = 1.0 / jnp.sqrt(fan_in)
        w = jax.random.uniform(kw, (fan_out, fan_in), jnp.float32, -bound, bound)
        b = jax.random.uniform(kb, (fan_out,), jnp.float32, -bound, bound)
        return w, b

    w1, b1 = lin(ks[0], ks[1], LATENT, HIDDEN)
    w2, b2 = lin(ks[2], ks[3], HIDDEN, HIDDEN)
    w3, b3 = lin(ks[4], ks[5], HIDDEN, 1)
    return {
        "w1": w1, "b1": b1, "a1": jnp.array(0.25, jnp.float32),
        "w2": w2, "b2": b2, "a2": jnp.array(0.25, jnp.float32),
        "w3": w3, "b3": b3,
    }


def _reference_forward(x, p):
    def prelu(h, a):
        return jnp.where(h >= 0.0, h, a * h)
    h = prelu(x @ p["w1"].T + p["b1"], p["a1"])
    h = prelu(h @ p["w2"].T + p["b2"], p["a2"])
    return h @ p["w3"].T + p["b3"]


if __name__ == "__main__":
    key = jax.random.PRNGKey(0)
    kx, kp = jax.random.split(key)

    params = init_params(kp)
    prep = prepare_params(params)   # one-time layout prep (not per call)

    # Small single-tile check.
    B = 8
    x = jax.random.normal(kx, (B, LATENT), jnp.float32)
    out = jax.block_until_ready(discriminator_forward(x, prep))
    ref = _reference_forward(x, params)
    assert out.shape == (B, 1)
    # bf16 MXU inputs -> looser tolerance vs the f32 reference.
    assert jnp.allclose(out, ref, atol=3e-2, rtol=3e-2), "mismatch (B=8)"

    # Multi-tile + padding check (exercises the batch grid / pipeline).
    B2 = 520
    x2 = jax.random.normal(jax.random.PRNGKey(1), (B2, LATENT), jnp.float32)
    out2 = jax.block_until_ready(discriminator_forward(x2, prep, block_rows=256))
    ref2 = _reference_forward(x2, params)
    assert out2.shape == (B2, 1)
    assert jnp.allclose(out2, ref2, atol=3e-2, rtol=3e-2), "mismatch (B=520)"

    print("KERNEL_OK")
</pallas_src>

<mosaic_0001>
module attributes {stable_mosaic.version = 11 : i64} {
  func.func @_discriminator_kernel(%arg0: i32, %arg1: memref<8x256xf32, #tpu.memory_space<vmem>>, %arg2: memref<256x128xbf16, #tpu.memory_space<vmem>>, %arg3: memref<1x128xf32, #tpu.memory_space<vmem>>, %arg4: memref<128x128xbf16, #tpu.memory_space<vmem>>, %arg5: memref<1x128xf32, #tpu.memory_space<vmem>>, %arg6: memref<1x128xf32, #tpu.memory_space<vmem>>, %arg7: memref<3xf32, #tpu.memory_space<smem>>, %arg8: memref<8x1xf32, #tpu.memory_space<vmem>>) attributes {dimension_semantics = [#tpu.dimension_semantics<parallel>], iteration_bounds = array<i64: 1>, scalar_prefetch = 0 : i64, scratch_operands = 0 : i64, tpu.core_type = #tpu.core_type<tc>, window_params = [{transform_indices = @transform_0, window_bounds = array<i64: 8, 256>}, {pipeline_mode = #tpu.pipeline_mode<synchronous>, transform_indices = @transform_1, window_bounds = array<i64: 256, 128>}, {pipeline_mode = #tpu.pipeline_mode<synchronous>, transform_indices = @transform_2, window_bounds = array<i64: 1, 128>}, {pipeline_mode = #tpu.pipeline_mode<synchronous>, transform_indices = @transform_3, window_bounds = array<i64: 128, 128>}, {pipeline_mode = #tpu.pipeline_mode<synchronous>, transform_indices = @transform_4, window_bounds = array<i64: 1, 128>}, {pipeline_mode = #tpu.pipeline_mode<synchronous>, transform_indices = @transform_5, window_bounds = array<i64: 1, 128>}, {transform_indices = @transform_6, window_bounds = array<i64: 3>}, {transform_indices = @transform_7, window_bounds = array<i64: 8, 1>}]} {
    %c0 = arith.constant 0 : index
    %c0_0 = arith.constant 0 : index
    %0 = vector.load %arg1[%c0, %c0_0] : memref<8x256xf32, #tpu.memory_space<vmem>>, vector<8x256xf32>
    %1 = arith.truncf %0 : vector<8x256xf32> to vector<8x256xbf16>
    %c0_1 = arith.constant 0 : index
    %c0_2 = arith.constant 0 : index
    %2 = vector.load %arg2[%c0_1, %c0_2] : memref<256x128xbf16, #tpu.memory_space<vmem>>, vector<256x128xbf16>
    %cst = arith.constant dense<0.000000e+00> : vector<8x128xf32>
    %3 = tpu.matmul %1, %2, %cst {dimension_numbers = #tpu.dot_dimension_numbers<[1], [0], [0], [1], [0, 0, 1, 1], [], []>} : vector<8x256xbf16>, vector<256x128xbf16>, vector<8x128xf32> -> vector<8x128xf32>
    %c0_3 = arith.constant 0 : index
    %c0_4 = arith.constant 0 : index
    %4 = vector.load %arg3[%c0_3, %c0_4] : memref<1x128xf32, #tpu.memory_space<vmem>>, vector<1x128xf32>
    %5 = vector.broadcast %4 : vector<1x128xf32> to vector<8x128xf32>
    %6 = arith.addf %3, %5 : vector<8x128xf32>
    %c0_5 = arith.constant 0 : index
    %7 = memref.load %arg7[%c0_5] : memref<3xf32, #tpu.memory_space<smem>>
    %cst_6 = arith.constant 0.000000e+00 : f32
    %8 = vector.broadcast %cst_6 : f32 to vector<8x128xf32>
    %9 = arith.cmpf oge, %6, %8 : vector<8x128xf32>
    %10 = vector.broadcast %7 : f32 to vector<8x128xf32>
    %11 = arith.mulf %10, %6 : vector<8x128xf32>
    %12 = arith.select %9, %6, %11 : vector<8x128xi1>, vector<8x128xf32>
    %13 = arith.truncf %12 : vector<8x128xf32> to vector<8x128xbf16>
    %c0_7 = arith.constant 0 : index
    %c0_8 = arith.constant 0 : index
    %14 = vector.load %arg4[%c0_7, %c0_8] : memref<128x128xbf16, #tpu.memory_space<vmem>>, vector<128x128xbf16>
    %cst_9 = arith.constant dense<0.000000e+00> : vector<8x128xf32>
    %15 = tpu.matmul %13, %14, %cst_9 {dimension_numbers = #tpu.dot_dimension_numbers<[1], [0], [0], [1], [0, 0, 1, 1], [], []>} : vector<8x128xbf16>, vector<128x128xbf16>, vector<8x128xf32> -> vector<8x128xf32>
    %c0_10 = arith.constant 0 : index
    %c0_11 = arith.constant 0 : index
    %16 = vector.load %arg5[%c0_10, %c0_11] : memref<1x128xf32, #tpu.memory_space<vmem>>, vector<1x128xf32>
    %17 = vector.broadcast %16 : vector<1x128xf32> to vector<8x128xf32>
    %18 = arith.addf %15, %17 : vector<8x128xf32>
    %c1 = arith.constant 1 : index
    %19 = memref.load %arg7[%c1] : memref<3xf32, #tpu.memory_space<smem>>
    %cst_12 = arith.constant 0.000000e+00 : f32
    %20 = vector.broadcast %cst_12 : f32 to vector<8x128xf32>
    %21 = arith.cmpf oge, %18, %20 : vector<8x128xf32>
    %22 = vector.broadcast %19 : f32 to vector<8x128xf32>
    %23 = arith.mulf %22, %18 : vector<8x128xf32>
    %24 = arith.select %21, %18, %23 : vector<8x128xi1>, vector<8x128xf32>
    %c0_13 = arith.constant 0 : index
    %c0_14 = arith.constant 0 : index
    %25 = vector.load %arg6[%c0_13, %c0_14] : memref<1x128xf32, #tpu.memory_space<vmem>>, vector<1x128xf32>
    %26 = vector.broadcast %25 : vector<1x128xf32> to vector<8x128xf32>
    %27 = arith.mulf %24, %26 : vector<8x128xf32>
    %cst_15 = arith.constant dense<0.000000e+00> : vector<8xf32>
    %28 = vector.multi_reduction <add>, %27, %cst_15 [1] : vector<8x128xf32> to vector<8xf32>
    %29 = vector.shape_cast %28 : vector<8xf32> to vector<8x1xf32>
    %c2 = arith.constant 2 : index
    %30 = memref.load %arg7[%c2] : memref<3xf32, #tpu.memory_space<smem>>
    %31 = vector.broadcast %30 : f32 to vector<8x1xf32>
    %32 = arith.addf %29, %31 : vector<8x1xf32>
    %c0_16 = arith.constant 0 : index
    %c0_17 = arith.constant 0 : index
    %33 = vector.load %arg8[%c0_16, %c0_17] : memref<8x1xf32, #tpu.memory_space<vmem>>, vector<8x1xf32>
    tpu.vector_store %arg8[%c0_16, %c0_17], %32 {strides = array<i32>} : memref<8x1xf32, #tpu.memory_space<vmem>>, vector<8x1xf32>,
    return
  }
  func.func @transform_0(%arg0: i32) -> (i32, i32) {
    %c0_i32 = arith.constant 0 : i32
    %c0_i32_0 = arith.constant 0 : i32
    return %arg0, %c0_i32 : i32, i32
  }
  func.func @transform_1(%arg0: i32) -> (i32, i32) {
    %c0_i32 = arith.constant 0 : i32
    %c0_i32_0 = arith.constant 0 : i32
    %c0_i32_1 = arith.constant 0 : i32
    return %c0_i32, %c0_i32_0 : i32, i32
  }
  func.func @transform_2(%arg0: i32) -> (i32, i32) {
    %c0_i32 = arith.constant 0 : i32
    %c0_i32_0 = arith.constant 0 : i32
    %c0_i32_1 = arith.constant 0 : i32
    return %c0_i32, %c0_i32_0 : i32, i32
  }
  func.func @transform_3(%arg0: i32) -> (i32, i32) {
    %c0_i32 = arith.constant 0 : i32
    %c0_i32_0 = arith.constant 0 : i32
    %c0_i32_1 = arith.constant 0 : i32
    return %c0_i32, %c0_i32_0 : i32, i32
  }
  func.func @transform_4(%arg0: i32) -> (i32, i32) {
    %c0_i32 = arith.constant 0 : i32
    %c0_i32_0 = arith.constant 0 : i32
    %c0_i32_1 = arith.constant 0 : i32
    return %c0_i32, %c0_i32_0 : i32, i32
  }
  func.func @transform_5(%arg0: i32) -> (i32, i32) {
    %c0_i32 = arith.constant 0 : i32
    %c0_i32_0 = arith.constant 0 : i32
    %c0_i32_1 = arith.constant 0 : i32
    return %c0_i32, %c0_i32_0 : i32, i32
  }
  func.func @transform_6(%arg0: i32) -> i32 {
    %c0_i32 = arith.constant 0 : i32
    %c0_i32_0 = arith.constant 0 : i32
    return %c0_i32 : i32
  }
  func.func @transform_7(%arg0: i32) -> (i32, i32) {
    %c0_i32 = arith.constant 0 : i32
    %c0_i32_0 = arith.constant 0 : i32
    return %arg0, %c0_i32 : i32, i32
  }
}

</mosaic_0001>

<bundles_post_ra>
// kernel: tpu_custom_call.1
= control target key start
LH: loop header
LB: loop body
LE: loop exit
PB: predicated region body
PF: predicated region fallthrough
CT: control target
= control target key end

     0   :  { %12 = vsyncpa [#allocation3], 0  ;;  %s703_s0 = inlined_call_operand.hbm [shape: f32[8,256], index: 0, kind: input, shape index: {}]   ;;  %s704_s1 = inlined_call_operand.hbm [shape: bf16[256,128], index: 1, kind: input, shape index: {}]   ;;  %s705_s2 = inlined_call_operand.vmem [shape: f32[1,128], index: 2, kind: input, shape index: {}]   ;;  %s706_s3 = inlined_call_operand.hbm [shape: bf16[128,128], index: 3, kind: input, shape index: {}]   ;;  %s707_s4 = inlined_call_operand.vmem [shape: f32[1,128], index: 4, kind: input, shape index: {}]   ;;  %s708_s5 = inlined_call_operand.vmem [shape: f32[1,128], index: 5, kind: input, shape index: {}]   ;;  %s709_s6 = inlined_call_operand.vmem [shape: f32[3], index: 6, kind: input, shape index: {}]   ;;  %s710_s7 = inlined_call_operand.vmem [shape: f32[8,1], index: 7, kind: output, shape index: {}]  }
   0x1   :  { %13 = vsyncpa [#allocation6], 0 }
   0x2   :  { %14 = vsyncpa [#allocation4], 0  ;;  %s598_s24 = smov [#allocation5]   ;;  %s514_s28 = scalar_lea.hbm %s704_s1, 2048 }
   0x3   :  { %s30_s25 = sshll.u32 %s598_s24, 4  ;;  %p515_p0 = scmp.ne.s32.totalorder %s704_s1, %s514_s28  ;;  %s31_s25 = int_to_ptr.vmem [resolvable:$true] %s30_s25 }
   0x4   :  { %p518_p1 = scmp.lt.u32.totalorder %s514_s28, %s704_s1 }
   0x6   :  { %p520_p2 = pnand %p518_p1, %p515_p0 }
   0x8   :  { %523 = shalt.err (!%p520_p2)
}
   0x9   :  { %s524_s10 = scalar_lea.vmem %s31_s25, 2048  ;;  %p529_p4 = scmp.lt.s32.totalorder %s31_s25, %s31_s25 }
   0xa   :  { %p525_p3 = scmp.ne.s32.totalorder %s31_s25, %s524_s10  ;;  %p530_p5 = scmp.lt.s32.totalorder %s524_s10, %s524_s10 }
   0xc   :  { %p531_p6 = por %p530_p5, %p529_p4 }
   0xe   :  { %p532_p7 = pnand %p531_p6, %p525_p3 }
  0x10   :  { %535 = shalt.err (!%p532_p7)
}
  0x11   :  { %s599_s11 = smov 64   ;;  %s600_s12 = smov 4  }
  0x12   :  { %36 = dma.hbm_to_vmem [thread:$0]  %s704_s1, 2048, %s31_s25, [#allocation6], %s599_s11, %s599_s11, %s600_s12  }
  0x13   :  { %s601_s15 = smov [#allocation2]   ;;  %s602_s17 = smov [#allocation7]  }
  0x14   :  { %s21_s16 = sshll.u32 %s601_s15, 4  ;;  %s44_s18 = sshll.u32 %s602_s17, 4  ;;  %s22_s16 = int_to_ptr.vmem [resolvable:$true] %s21_s16  ;;  %s45_s18 = int_to_ptr.vmem [resolvable:$true] %s44_s18 }
  0x15   :  { %s536_s21 = scalar_lea.hbm %s703_s0, 256 }
  0x16   :  { %p537_p8 = scmp.ne.s32.totalorder %s703_s0, %s536_s21  ;;  %p540_p9 = scmp.lt.u32.totalorder %s536_s21, %s703_s0 }
  0x18   :  { %p542_p10 = pnand %p540_p9, %p537_p8 }
  0x1a   :  { %545 = shalt.err (!%p542_p10)
}
  0x1b   :  { %s546_s1 = scalar_lea.vmem %s22_s16, 256  ;;  %p551_p12 = scmp.lt.s32.totalorder %s22_s16, %s22_s16 }
  0x1c   :  { %p547_p11 = scmp.ne.s32.totalorder %s22_s16, %s546_s1  ;;  %p552_p13 = scmp.lt.s32.totalorder %s546_s1, %s546_s1 }
  0x1e   :  { %p553_p0 = por %p552_p13, %p551_p12 }
  0x20   :  { %p554_p1 = pnand %p553_p0, %p547_p11 }
  0x22   :  { %557 = shalt.err (!%p554_p1)
}
  0x23   :  { %24 = dma.hbm_to_vmem [thread:$0]  %s703_s0, 256, %s22_s16, [#allocation3]  }
  0x24   :  { %s61_s30 = sshll.u32 %s709_s6, 4  ;;  %s558_s10 = scalar_lea.hbm %s706_s3, 1024  ;;  %s62_s30 = int_to_ptr.vmem [resolvable:$true] %s61_s30 }
  0x25   :  { %p559_p2 = scmp.ne.s32.totalorder %s706_s3, %s558_s10  ;;  %p562_p3 = scmp.lt.u32.totalorder %s558_s10, %s706_s3 }
  0x27   :  { %p564_p4 = pnand %p562_p3, %p559_p2 }
  0x29   :  { %567 = shalt.err (!%p564_p4)
}
  0x2a   :  { %s568_s0 = scalar_lea.vmem %s45_s18, 1024  ;;  %p573_p6 = scmp.lt.s32.totalorder %s45_s18, %s45_s18 }
  0x2b   :  { %p569_p5 = scmp.ne.s32.totalorder %s45_s18, %s568_s0  ;;  %p574_p7 = scmp.lt.s32.totalorder %s568_s0, %s568_s0 }
  0x2d   :  { %p575_p8 = por %p574_p7, %p573_p6 }
  0x2f   :  { %p576_p9 = pnand %p575_p8, %p569_p5 }
  0x31   :  { %579 = shalt.err (!%p576_p9)
}
  0x32   :  { %50 = dma.hbm_to_vmem [thread:$0]  %s706_s3, 1024, %s45_s18, [#allocation6], %s599_s11, %s599_s11, %s600_s12  }
  0x33   :  { %s580_s19 = scalar_lea.vmem %s62_s30, 16  ;;  %p585_p11 = scmp.lt.s32.totalorder %s62_s30, %s62_s30 }
  0x34   :  { %p581_p10 = scmp.ne.s32.totalorder %s62_s30, %s580_s19  ;;  %p586_p12 = scmp.lt.s32.totalorder %s580_s19, %s580_s19 }
  0x36   :  { %p587_p13 = por %p586_p12, %p585_p11 }
  0x38   :  { %p588_p0 = pnand %p587_p13, %p581_p10 }
  0x3a   :  { %591 = shalt.err (!%p588_p0)
}
  0x3b   :  { %s603_s20 = smov [#allocation8]  }
  0x3c   :  { %64 = dma.vmem_to_smem %s62_s30, 16, %s603_s20, [#allocation4]  }
  0x3d   :  { %592 = dma.done.wait [#allocation3], 256  }
  0x3e   :  { %593 = vsyncadd [#allocation3], 4294967040 }
  0x3f   :  { %594 = dma.done.wait [#allocation6], 3072  }
  0x40   :  { %595 = vsyncadd [#allocation6], 4294964224 }
  0x41   :  { %596 = dma.done.wait [#allocation4], 16  }
  0x42   :  { %597 = vsyncadd [#allocation4], 4294967280 }
  0x43   :  { %77 = sfence }
  0x44   :  { %v490_v0 = vld [vmem:[#allocation5 + $0x40] sm:$0xff]   ;;  %v604_v2 = vmov 0.0   ;;  %v492_v3 = vld [vmem:[#allocation5 + $0x48] sm:$0xff]   ;;  %v494_v5 = vld [vmem:[#allocation5 + $0x50] sm:$0xff]   ;;  %vm605_vm0 = vmmov 0   ;;  %s258_s3 = sld [smem:[#allocation8]] }
  0x45   :  { %v491_v1 = vld [vmem:[#allocation5] sm:$0xff]   ;;  %462 = vmatprep.subr.bf16.mxu1 %v604_v2  ;;  %431 = vmatprep.subr.bf16.mxu0 %v490_v0  ;;  %v493_v4 = vld [vmem:[#allocation5 + $0x8] sm:$0xff]   ;;  %v495_v6 = vld [vmem:[#allocation5 + $0x10] sm:$0xff]   ;;  %s428_s18 = sld [smem:[#allocation8 + $0x1]]  ;;  %s430_s24 = sld [smem:[#allocation8 + $0x2]]  ;;  %vm393_vm3 = vcmask 7168  }
  0x46   :  { %432 = vmatpush3.bf16.msra.mxu0 %v491_v1  ;;  %v496_v7 = vld [vmem:[#allocation5 + $0x58] sm:$0xff]   ;;  %v498_v9 = vld [vmem:[#allocation5 + $0x60] sm:$0xff]   ;;  %v500_v11 = vld [vmem:[#allocation5 + $0x68] sm:$0xff]   ;;  %478 = vmatprep.mubr.msk.bf16.mxu1 %vm605_vm0, %v604_v2 }
  0x47   :  { %433 = vmatprep.subr.bf16.mxu0 %v492_v3  ;;  %v497_v8 = vld [vmem:[#allocation5 + $0x18] sm:$0xff]   ;;  %v499_v10 = vld [vmem:[#allocation5 + $0x20] sm:$0xff]   ;;  %v501_v15 = vld [vmem:[#allocation5 + $0x28] sm:$0xff]  }
  0x48   :  { %v80_v12 = vld [vmem:[#allocation2 + $0x8] sm:$0xff]  ;;  %v506_v14 = vld [vmem:[#allocation7] sm:$0xff]   ;;  %v502_v16 = vld [vmem:[#allocation5 + $0x70] sm:$0xff]  }
  0x49   :  { %v82_v13 = vpack.c.bf16 %v80_v12, %v80_v12  ;;  %463 = vmatpush3.bf16.msra.mxu1 %v506_v14  ;;  %v507_v17 = vld [vmem:[#allocation7 + $0x8] sm:$0xff]   ;;  %v503_v18 = vld [vmem:[#allocation5 + $0x30] sm:$0xff]   ;;  %v504_v19 = vld [vmem:[#allocation5 + $0x78] sm:$0xff]  }
  0x4a   :  { %434 = vmatpush3.bf16.msra.mxu0 %v493_v4  ;;  %464 = vmatprep.subr.bf16.mxu1 %v604_v2  ;;  %v508_v20 = vld [vmem:[#allocation7 + $0x10] sm:$0xff]   ;;  %v505_v21 = vld [vmem:[#allocation5 + $0x38] sm:$0xff]   ;;  %v510_v25 = vld [vmem:[#allocation7 + $0x20] sm:$0xff]   ;;  %v260_v34 = vstv %s258_s3 }
  0x4b   :  { %435 = vmatprep.subr.bf16.mxu0 %v494_v5  ;;  %250 = vmatprep.mubr.bf16.mxu0 %v82_v13  ;;  %v79_v22 = vld [vmem:[#allocation2] sm:$0xff]  ;;  %v509_v23 = vld [vmem:[#allocation7 + $0x18] sm:$0xff]   ;;  %v511_v26 = vld [vmem:[#allocation7 + $0x28] sm:$0xff]   ;;  %v377_v42 = vstv %s428_s18  ;;  %v391_v51 = vstv %s430_s24 }
  0x4c   :  { %v81_v24 = vpack.c.bf16 %v79_v22, %v79_v22  ;;  %v512_v27 = vld [vmem:[#allocation7 + $0x30] sm:$0xff]   ;;  %v513_v28 = vld [vmem:[#allocation7 + $0x38] sm:$0xff]  }
  0x4d   :  { %465 = vmatpush3.bf16.msra.mxu1 %v507_v17  ;;  %v402_v30 = vld [vmem:[%s705_s2] ss:$0 sm:$0xff] }
  0x4e   :  { %436 = vmatpush3.bf16.msra.mxu0 %v495_v6  ;;  %466 = vmatprep.subr.bf16.mxu1 %v604_v2  ;;  %v419_v40 = vld [vmem:[%s707_s4] ss:$0 sm:$0xff] }
  0x4f   :  { %437 = vmatprep.subr.bf16.mxu0 %v496_v7  ;;  %v429_v48 = vld [vmem:[%s708_s5] ss:$0 sm:$0xff] }
  0x51   :  { %467 = vmatpush3.bf16.msra.mxu1 %v508_v20 }
  0x52   :  { %438 = vmatpush3.bf16.msra.mxu0 %v497_v8  ;;  %468 = vmatprep.subr.bf16.mxu1 %v604_v2 }
  0x53   :  { %439 = vmatprep.subr.bf16.mxu0 %v498_v9 }
  0x55   :  { %469 = vmatpush3.bf16.msra.mxu1 %v509_v23 }
  0x56   :  { %440 = vmatpush3.bf16.msra.mxu0 %v499_v10  ;;  %470 = vmatprep.subr.bf16.mxu1 %v604_v2 }
  0x57   :  { %441 = vmatprep.subr.bf16.mxu0 %v500_v11 }
  0x59   :  { %471 = vmatpush3.bf16.msra.mxu1 %v510_v25 }
  0x5a   :  { %442 = vmatpush3.bf16.msra.mxu0 %v501_v15  ;;  %472 = vmatprep.subr.bf16.mxu1 %v604_v2 }
  0x5b   :  { %443 = vmatprep.subr.bf16.mxu0 %v502_v16 }
  0x5d   :  { %473 = vmatpush3.bf16.msra.mxu1 %v511_v26 }
  0x5e   :  { %444 = vmatpush3.bf16.msra.mxu0 %v503_v18  ;;  %474 = vmatprep.subr.bf16.mxu1 %v604_v2 }
  0x5f   :  { %445 = vmatprep.subr.bf16.mxu0 %v504_v19 }
  0x61   :  { %475 = vmatpush3.bf16.msra.mxu1 %v512_v27 }
  0x62   :  { %446 = vmatpush3.bf16.msra.mxu0 %v505_v21  ;;  %476 = vmatprep.subr.bf16.mxu1 %v604_v2 }
  0x65   :  { %251 = vmatmul.mubr.bf16.vlgmr.msra.gmra.mrb[0].mxu0 %v81_v24  ;;  %477 = vmatpush3.bf16.msra.mxu1 %v513_v28 }
 0x138   :  { %v447_v29 = vpop.f32.mrb[0].mxu0 }
 0x139   :  { %v448_v31 = vpop.f32.mrb[1].mxu0 }
 0x13a   :  { %v449_v32 = vadd.f32 %v448_v31, %v447_v29  ;;  %v450_v33 = vpop.f32.mrb[2].mxu0 }
 0x13b   :  { %v451_v35 = vpop.f32.mrb[3].mxu0 }
 0x13c   :  { %v253_v36 = vadd.f32 %v449_v32, %v402_v30 }
 0x13e   :  { %v261_v37 = vmul.f32 %v260_v34, %v253_v36  ;;  %vm259_vm1 = vcmp.ge.f32.partialorder %v253_v36, 0.0 }
 0x140   :  { %v262_v38 = vsel %vm259_vm1, %v253_v36, %v261_v37 }
 0x141   :  { %v263_v39 = vpack.c.bf16 %v262_v38, %v262_v38 }
 0x143   :  { %479 = vmatmul.mubr.bf16.vlgmr.msra.gmra.mrb[0].mxu1 %v263_v39 }
 0x216   :  { %v369_v41 = vpop.f32.mrb[0].mxu1 }
 0x217   :  { %v370_v43 = vadd.f32 %v419_v40, %v369_v41  ;;  %v480_v44 = vpop.f32.mrb[1].mxu1 }
 0x218   :  { %v372_v45 = vpop.f32.mrb[2].mxu1 }
 0x219   :  { %v378_v46 = vmul.f32 %v377_v42, %v370_v43  ;;  %v481_v47 = vpop.f32.mrb[3].mxu1  ;;  %vm376_vm2 = vcmp.ge.f32.partialorder %v370_v43, 0.0 }
 0x21b   :  { %v379_v49 = vsel %vm376_vm2, %v370_v43, %v378_v46 }
 0x21c   :  { %v387_v50 = vmul.f32 %v429_v48, %v379_v49 }
 0x21e   :  { %388 = vadd.xlane.f32.xlu0 %v387_v50 }
 0x2ab   :  { %v389_v52 = vpop.xlane.xlu0 %388 }
 0x2ac   :  { %v392_v53 = vadd.f32 %v391_v51, %v389_v52 }
 0x2ae   :  { %394 = vst.msk [vmem:[%s710_s7] sm:$0xff] %vm393_vm3, %v392_v53 }
 0x2af   :  { %399 = vsyncpa [#allocation3], 1 }
 0x2b0   :  { %400 = vsyncpa [#allocation6], 1 }
 0x2b1   :  { %401 = vsyncpa [#allocation4], 1 }

</bundles_post_ra>
